<compile_context>
chip_gen: v7x
topology: tpu7x:2x2x1
jax: 0.10.0
libtpu: 0.0.40
codegen_flags: <defaults>
</compile_context>

<pallas_src>
import jax
import jax.numpy as jnp
from jax.experimental import pallas as pl
from jax.experimental.pallas import tpu as pltpu


def _x4_kernel(x_ref, o_ref):
    # Elementwise hot path: one vector load, one VPU multiply, one store.
    v = x_ref[...]
    o_ref[...] = v * jnp.asarray(4, dtype=v.dtype)


def _tpu_generation() -> str:
    """Best-effort chip-generation detection; 'unknown' on any failure."""
    try:
        kind = jax.devices()[0].device_kind.lower()
    except Exception:
        return "unknown"
    if "v7" in kind:
        return "v7x"
    if "v6" in kind:
        return "v6e"
    if "v5e" in kind or "v5 lite" in kind or "v5lite" in kind:
        return "v5e"
    return "unknown"


def _gen_params(gen: str):
    """Returns (bytes per buffer per BlockSpec, scoped-VMEM limit to request)."""
    if gen == "v7x":
        # ~3.2 TB/s HBM: larger blocks amortize the ~0.35 us/step overhead.
        # 5 MiB * 2 specs * 2 (double-buffer) = 20 MiB << 48 MiB < 64 MiB phys.
        return 5 * 1024 * 1024, 48 * 1024 * 1024
    if gen == "v6e":
        # 128 MiB physical VMEM: 6 MiB/buffer (~24 MiB live) under a 64 MiB limit.
        return 6 * 1024 * 1024, 64 * 1024 * 1024
    if gen == "v5e":
        # Keep the conservative 2 MiB/buffer; explicit 24 MiB limit for headroom
        # over the 16 MiB scoped default.
        return 2 * 1024 * 1024, 24 * 1024 * 1024
    # Other / unknown TPUs: middle-of-the-road settings.
    return 4 * 1024 * 1024, 64 * 1024 * 1024


def _run_x4_2d(x2d, block_rows, lane_w, grid, semantics, vmem_limit):
    rows = x2d.shape[0]
    return pl.pallas_call(
        _x4_kernel,
        out_shape=jax.ShapeDtypeStruct((rows, lane_w), x2d.dtype),
        grid_spec=pltpu.PrefetchScalarGridSpec(
            num_scalar_prefetch=0,
            grid=grid,
            in_specs=[pl.BlockSpec((block_rows, lane_w), lambda i: (i, 0))],
            out_specs=pl.BlockSpec((block_rows, lane_w), lambda i: (i, 0)),
        ),
        compiler_params=pltpu.CompilerParams(
            dimension_semantics=semantics,
            vmem_limit_bytes=vmem_limit,
        ),
    )(x2d)


def remove_dropout_forward(x: jax.Array) -> jax.Array:
    """Computes (x + x) * 2 == 4 * x with dropout treated as identity (eval)."""
    orig_shape = x.shape
    dtype = x.dtype
    total = x.size
    itemsize = jnp.dtype(dtype).itemsize

    gen = _tpu_generation()
    tile_bytes, vmem_limit = _gen_params(gen)

    # Sublane-packing-aware row alignment: f32 -> 8, bf16/f16 -> 16, int8/fp8 -> 32.
    row_align = 8 * max(1, 4 // itemsize)

    x_flat = x.reshape(-1)

    def run_aligned(flat, lane_w):
        """Runs the kernel on a flat array whose size is a multiple of lane_w."""
        rows = flat.size // lane_w
        x2d = flat.reshape(rows, lane_w)
        block_rows = (tile_bytes // (lane_w * itemsize)) // row_align * row_align
        block_rows = max(row_align, block_rows)
        if rows <= block_rows:
            block_rows = rows          # single full-array block
            grid = (1,)
        else:
            grid = (pl.cdiv(rows, block_rows),)  # partial tail handled by masked stores
        # On v7x, CORE_PARALLEL shards grid steps across both TensorCores
        # (plain "parallel" vs "arbitrary" is a codegen no-op on 1-TC chips).
        core_parallel = getattr(pltpu, "CORE_PARALLEL", None)
        if gen == "v7x" and core_parallel is not None and grid[0] > 1:
            semantics = (core_parallel,)
        else:
            semantics = ("parallel",)
        out2d = _run_x4_2d(x2d, block_rows, lane_w, grid, semantics, vmem_limit)
        return out2d.reshape(-1)

    # Pick the widest lane dimension (multiple of 128, up to 8192) that divides
    # the flat size: lane-dense output is the biggest measured lever and no
    # pad / post-slice copies are needed on this path.
    lane_w = None
    for cand in (8192, 4096, 2048, 1024, 512, 256, 128):
        if total % cand == 0:
            lane_w = cand
            break

    if lane_w is not None:
        return run_aligned(x_flat, lane_w).reshape(orig_shape)

    # Ragged flat size (not a multiple of 128) — rare fallback path.
    aligned = (total // 128) * 128
    if aligned == 0:
        # Tiny input (< 128 elements): one full-array block, (1, total) is legal
        # because block_shape equals the full array dims.
        out2d = _run_x4_2d(
            x_flat.reshape(1, total), 1, total, (1,), ("parallel",), vmem_limit
        )
        return out2d.reshape(orig_shape)

    # Kernel handles the 128-aligned prefix (one HBM read + one write, no pad);
    # the < 128-element tail is a single plain XLA multiply, then stitched back.
    prefix_out = run_aligned(x_flat[:aligned], 128)
    tail_out = x_flat[aligned:] * jnp.asarray(4, dtype=dtype)
    return jnp.concatenate([prefix_out, tail_out]).reshape(orig_shape)


if __name__ == "__main__":
    key = jax.random.PRNGKey(0)
    # Small NCHW input consistent with the module: [N=2, C=4, H=16, W=16]
    x = jax.random.normal(key, (2, 4, 16, 16), dtype=jnp.float32)

    out = remove_dropout_forward(x)
    out = jax.block_until_ready(out)

    # Reference: (x + x) * 2 == 4 * x (dropout is identity at eval time)
    ref = (x + x) * 2.0
    assert out.shape == x.shape and out.dtype == x.dtype
    assert jnp.allclose(out, ref, atol=1e-6, rtol=1e-6)

    print("KERNEL_OK")
</pallas_src>

<mosaic_0001>
module attributes {stable_mosaic.version = 11 : i64} {
  func.func @_x4_kernel(%arg0: i32, %arg1: memref<1x2048xf32, #tpu.memory_space<vmem>>, %arg2: memref<1x2048xf32, #tpu.memory_space<vmem>>) attributes {dimension_semantics = [#tpu.dimension_semantics<parallel>], iteration_bounds = array<i64: 1>, scalar_prefetch = 0 : i64, scratch_operands = 0 : i64, tpu.core_type = #tpu.core_type<tc>, window_params = [{transform_indices = @transform_0, window_bounds = array<i64: 1, 2048>}, {transform_indices = @transform_1, window_bounds = array<i64: 1, 2048>}]} {
    %c0 = arith.constant 0 : index
    %c0_0 = arith.constant 0 : index
    %0 = vector.load %arg1[%c0, %c0_0] : memref<1x2048xf32, #tpu.memory_space<vmem>>, vector<1x2048xf32>
    %cst = arith.constant 4.000000e+00 : f32
    %1 = vector.broadcast %cst : f32 to vector<1x2048xf32>
    %2 = arith.mulf %0, %1 : vector<1x2048xf32>
    %c0_1 = arith.constant 0 : index
    %c0_2 = arith.constant 0 : index
    %3 = vector.load %arg2[%c0_1, %c0_2] : memref<1x2048xf32, #tpu.memory_space<vmem>>, vector<1x2048xf32>
    tpu.vector_store %arg2[%c0_1, %c0_2], %2 {strides = array<i32>} : memref<1x2048xf32, #tpu.memory_space<vmem>>, vector<1x2048xf32>,
    return
  }
  func.func @transform_0(%arg0: i32) -> (i32, i32) {
    %c0_i32 = arith.constant 0 : i32
    %c0_i32_0 = arith.constant 0 : i32
    return %arg0, %c0_i32 : i32, i32
  }
  func.func @transform_1(%arg0: i32) -> (i32, i32) {
    %c0_i32 = arith.constant 0 : i32
    %c0_i32_0 = arith.constant 0 : i32
    return %arg0, %c0_i32 : i32, i32
  }
}

</mosaic_0001>

<bundles_post_ra>
// kernel: tpu_custom_call.1
= control target key start
LH: loop header
LB: loop body
LE: loop exit
PB: predicated region body
PF: predicated region fallthrough
CT: control target
= control target key end

     0   :  { %6 = vsyncpa [#allocation3], 0  ;;  %s128_s0 = inlined_call_operand.hbm [shape: f32[1,2048], index: 0, kind: input, shape index: {}]   ;;  %s129_s1 = inlined_call_operand.hbm [shape: f32[1,2048], index: 1, kind: output, shape index: {}]  }
   0x1   :  { %7 = vsyncpa [#allocation4], 0  ;;  %s92_s6 = smov [#allocation2]   ;;  %s44_s10 = scalar_lea.hbm %s128_s0, 256 }
   0x2   :  { %s14_s7 = sshll.u32 %s92_s6, 4  ;;  %p45_p0 = scmp.ne.s32.totalorder %s128_s0, %s44_s10  ;;  %s15_s7 = int_to_ptr.vmem [resolvable:$true] %s14_s7 }
   0x3   :  { %p48_p1 = scmp.lt.u32.totalorder %s44_s10, %s128_s0 }
   0x5   :  { %p50_p2 = pnand %p48_p1, %p45_p0 }
   0x7   :  { %53 = shalt.err (!%p50_p2)
}
   0x8   :  { %s54_s15 = scalar_lea.vmem %s15_s7, 256  ;;  %p59_p4 = scmp.lt.s32.totalorder %s15_s7, %s15_s7 }
   0x9   :  { %p55_p3 = scmp.ne.s32.totalorder %s15_s7, %s54_s15  ;;  %p60_p5 = scmp.lt.s32.totalorder %s54_s15, %s54_s15 }
   0xb   :  { %p61_p6 = por %p60_p5, %p59_p4 }
   0xd   :  { %p62_p7 = pnand %p61_p6, %p55_p3 }
   0xf   :  { %65 = shalt.err (!%p62_p7)
}
  0x10   :  { %17 = dma.hbm_to_vmem [thread:$0]  %s128_s0, 256, %s15_s7, [#allocation3]  }
  0x11   :  { %88 = dma.done.wait [#allocation3], 256  }
  0x12   :  { %89 = vsyncadd [#allocation3], 4294967040  ;;  %s93_s18 = smov [#allocation5]   ;;  %v21_v0 = vld [vmem:[#allocation2] sm:$0xff]  ;;  %v22_v1 = vld [vmem:[#allocation2 + $0x8] sm:$0xff] }
  0x13   :  { %s33_s19 = sshll.u32 %s93_s18, 4  ;;  %v23_v2 = vmul.f32 4.0, %v21_v0  ;;  %v24_v3 = vmul.f32 4.0, %v22_v1  ;;  %s34_s19 = int_to_ptr.vmem [resolvable:$true] %s33_s19 }
  0x14   :  { %s66_s20 = scalar_lea.vmem %s34_s19, 256  ;;  %p71_p9 = scmp.lt.s32.totalorder %s34_s19, %s34_s19 }
  0x15   :  { %25 = vst [vmem:[#allocation5] sm:$0xff] %v23_v2  ;;  %26 = vst [vmem:[#allocation5 + $0x8] sm:$0xff] %v24_v3  ;;  %p67_p8 = scmp.ne.s32.totalorder %s34_s19, %s66_s20  ;;  %p72_p10 = scmp.lt.s32.totalorder %s66_s20, %s66_s20 }
  0x17   :  { %p73_p11 = por %p72_p10, %p71_p9 }
  0x19   :  { %p74_p12 = pnand %p73_p11, %p67_p8 }
  0x1b   :  { %77 = shalt.err (!%p74_p12)
}
  0x1c   :  { %s78_s22 = scalar_lea.hbm %s129_s1, 256 }
  0x1d   :  { %p79_p13 = scmp.ne.s32.totalorder %s129_s1, %s78_s22  ;;  %p82_p0 = scmp.lt.u32.totalorder %s78_s22, %s129_s1 }
  0x1f   :  { %p84_p1 = pnand %p82_p0, %p79_p13 }
  0x21   :  { %87 = shalt.err (!%p84_p1)
}
  0x22   :  { %36 = dma.vmem_to_hbm [thread:$0]  %s34_s19, 256, %s129_s1, [#allocation4]  }
  0x23   :  { %90 = dma.done.wait [#allocation4], 256  }
  0x24   :  { %91 = vsyncadd [#allocation4], 4294967040 }
  0x25   :  { %40 = vsyncpa [#allocation3], 1 }
  0x26   :  { %41 = vsyncpa [#allocation4], 1 }

</bundles_post_ra>
